<compile_context>
chip_gen: v7x
topology: tpu7x:2x2x1
jax: 0.10.0
libtpu: 0.0.40
codegen_flags: <defaults>
</compile_context>

<pallas_src>
import jax
import jax.numpy as jnp
from jax.experimental import pallas as pl
from jax.experimental.pallas import tpu as pltpu


# ----------------------------- helpers -------------------------------------


def _round_up(x, m):
    return ((x + m - 1) // m) * m


def _pick_chunk(total, target, steps=(256, 128)):
    """Largest chunk <= target that evenly divides `total`, preferring 256-multiples."""
    if total <= target:
        return total
    for step in steps:
        c = (target // step) * step
        while c >= step:
            if total % c == 0:
                return c
            c -= step
    return total  # fall back to no chunking


def _pad2(rows, cols, itemsize):
    """Bytes of a VMEM buffer after sublane/lane tile padding ((8,128) f32 / (16,128) bf16)."""
    sub = 8 * max(1, 4 // itemsize)
    return _round_up(max(rows, 1), sub) * _round_up(max(cols, 1), 128) * itemsize


def _tpu_config():
    """Generation-aware tile defaults + physical VMEM capacity."""
    cap = 128 << 20
    try:
        cap = int(pltpu.get_tpu_info().vmem_capacity_bytes)
    except Exception:
        pass
    if cap <= (96 << 20):
        # v7x-like: 64 MiB VMEM, 3.2 TB/s HBM -> trade tile size for fit.
        return 256, 256, cap
    # v5e/v6e: 128 MiB VMEM -> bigger token tile for weight-panel reuse.
    return 512, 512, cap


def _vmem_limit(est_bytes, cap_bytes):
    """Scoped VMEM limit: padded estimate + headroom, clamped to 90% of physical."""
    return int(min(max(est_bytes + (4 << 20), 32 << 20), int(cap_bytes * 0.9)))


# ----------------------------- kernels -------------------------------------


def _ff_kernel(x_ref, w1_ref, b1_ref, w2_ref, b2_ref, ff_ref, acc_ref):
    """FeedForward: GELU_tanh(x @ W1 + b1) @ W2 + b2, streamed over inner-dim panels."""
    k = pl.program_id(1)

    @pl.when(k == 0)
    def _init():
        acc_ref[...] = jnp.zeros_like(acc_ref)

    # proj-in on one column panel of W1: bf16 MXU operands, f32 accumulation.
    h = jnp.dot(x_ref[...], w1_ref[...], preferred_element_type=jnp.float32)
    h = h + b1_ref[...]
    h = jax.nn.gelu(h, approximate=True)  # tanh-GELU in f32 (EUP path)

    # proj-out partial product over this inner-dim panel (P3 accumulator).
    acc_ref[...] += jnp.dot(h.astype(jnp.bfloat16), w2_ref[...],
                            preferred_element_type=jnp.float32)

    @pl.when(k == pl.num_programs(1) - 1)
    def _finalize():
        ff_ref[...] = (acc_ref[...] + b2_ref[...]).astype(ff_ref.dtype)


def _out_linear_kernel(ff_ref, wout_ref, bout_ref, out_ref):
    """Zero-initialized out Linear: out = ff @ Wout + bout (bf16 MXU, f32 acc)."""
    out = jnp.dot(ff_ref[...].astype(jnp.bfloat16), wout_ref[...],
                  preferred_element_type=jnp.float32) + bout_ref[...]
    out_ref[...] = out.astype(out_ref.dtype)


# ----------------------------- wrapper -------------------------------------


def input_mapping_block(x, w1, b1, w2, b2, wout, bout, *, tm=None, tk=None):
    """x: (B, S, dim). Linear weights stored transposed: (in_features, out_features).

    Returns (output_hidden_states, control_hidden_states), each (B, S, dim).
    """
    B, S, dim = x.shape
    inner = w1.shape[1]
    M = B * S
    out_dtype = x.dtype

    tm_def, tk_def, vmem_cap = _tpu_config()
    tm = tm_def if tm is None else tm
    tk = tk_def if tk is None else tk

    # Row tile: large for real workloads, clamped (+ zero-padded) for small ones.
    tm_eff = min(tm, _round_up(M, 8))
    M_pad = _round_up(M, tm_eff)
    if M_pad // tm_eff < 2 and M > 8:
        # >= 2 token tiles so the "parallel" axis can shard across both v7x TCs.
        tm_eff = _round_up(-(-M // 2), 8)
        M_pad = 2 * tm_eff
    # Panel width for streaming W1 columns / W2 rows over the inner dimension.
    tk_eff = _pick_chunk(inner, tk)

    x2 = x.reshape(M, dim)
    if M_pad != M:
        x2 = jnp.pad(x2, ((0, M_pad - M), (0, 0)))
    # bf16 MXU operands (halves streamed HBM bytes); accumulation stays f32.
    x2 = x2.astype(jnp.bfloat16)
    w1_b = w1.astype(jnp.bfloat16)
    w2_b = w2.astype(jnp.bfloat16)
    wout_b = wout.astype(jnp.bfloat16)
    b1_2 = b1.reshape(1, inner).astype(jnp.float32)
    b2_2 = b2.reshape(1, dim).astype(jnp.float32)
    bout_2 = bout.reshape(1, dim).astype(jnp.float32)

    n_row_tiles = M_pad // tm_eff
    grid_ff = (n_row_tiles, inner // tk_eff)

    row = lambda i, k: (i, 0)        # token tiles / outputs
    colpanel = lambda i, k: (0, k)   # W1 / b1 column panels
    rowpanel = lambda i, k: (k, 0)   # W2 row panels
    const = lambda i, k: (0, 0)      # grid-invariant params

    # VMEM budget for the FeedForward kernel (tile-padded, incl. the h temp).
    est_ff = (
        2 * _pad2(tm_eff, dim, 2)        # x tile (bf16), double-buffered
        + 2 * _pad2(dim, tk_eff, 2)      # W1 column panel (bf16)
        + 2 * _pad2(1, tk_eff, 4)        # b1 panel
        + 2 * _pad2(tk_eff, dim, 2)      # W2 row panel (bf16)
        + 1 * _pad2(1, dim, 4)           # b2 (single-buffered)
        + 2 * _pad2(tm_eff, dim, 4)      # ff output, double-buffered
        + 1 * _pad2(tm_eff, dim, 4)      # f32 accumulator scratch
        + 2 * _pad2(tm_eff, tk_eff, 4)   # (tm, tk) GELU intermediate + bf16 copy
    )
    cost_ff = pl.CostEstimate(
        flops=int(4 * M_pad * dim * inner),
        transcendentals=int(M_pad * inner),
        bytes_accessed=int(M_pad * dim * (2 + 4)
                           + n_row_tiles * (2 * dim * inner * 2)
                           + (inner + dim) * 4),
    )

    # TODO(synk): for toy dims < 128 the output stores are lane-masked; real
    # diffusion dims (multiples of 128) are lane-dense.
    ff2 = pl.pallas_call(
        _ff_kernel,
        out_shape=jax.ShapeDtypeStruct((M_pad, dim), out_dtype),
        grid_spec=pltpu.PrefetchScalarGridSpec(
            num_scalar_prefetch=0,
            grid=grid_ff,
            in_specs=[
                pl.BlockSpec((tm_eff, dim), row),       # x tile (bf16)
                pl.BlockSpec((dim, tk_eff), colpanel),  # W1 panel (bf16)
                pl.BlockSpec((1, tk_eff), colpanel),    # b1 panel
                pl.BlockSpec((tk_eff, dim), rowpanel),  # W2 panel (bf16)
                pl.BlockSpec((1, dim), const,
                             pipeline_mode=pl.Buffered(1)),  # b2 (grid-invariant)
            ],
            out_specs=pl.BlockSpec((tm_eff, dim), row),      # ff (control_hidden_states)
            scratch_shapes=[pltpu.VMEM((tm_eff, dim), jnp.float32)],
        ),
        compiler_params=pltpu.CompilerParams(
            dimension_semantics=("parallel", "arbitrary"),
            vmem_limit_bytes=_vmem_limit(est_ff, vmem_cap),
        ),
        cost_estimate=cost_ff,
    )(x2, w1_b, b1_2, w2_b, b2_2)

    # Second, small kernel for the zero-initialized out Linear. Keeping it out of
    # the FeedForward kernel frees dim*dim of resident VMEM there (v7x fit).
    # TODO(synk): for very large dim (bf16 Wout > ~half of VMEM) stream Wout in
    # output-column panels instead of keeping it fully resident.
    est_out = (
        2 * _pad2(tm_eff, dim, 4)        # ff tile in (f32), double-buffered
        + 1 * _pad2(dim, dim, 2)         # Wout (bf16), grid-invariant
        + 1 * _pad2(1, dim, 4)           # bout
        + 2 * _pad2(tm_eff, dim, 4)      # out tile, double-buffered
        + _pad2(tm_eff, dim, 2) + _pad2(tm_eff, dim, 4)  # cast / result temps
    )
    cost_out = pl.CostEstimate(
        flops=int(2 * M_pad * dim * dim),
        transcendentals=0,
        bytes_accessed=int(M_pad * dim * (4 + 4) + dim * dim * 2 + dim * 4),
    )

    out2 = pl.pallas_call(
        _out_linear_kernel,
        out_shape=jax.ShapeDtypeStruct((M_pad, dim), out_dtype),
        grid_spec=pltpu.PrefetchScalarGridSpec(
            num_scalar_prefetch=0,
            grid=(n_row_tiles,),
            in_specs=[
                pl.BlockSpec((tm_eff, dim), lambda i: (i, 0)),   # ff tile
                pl.BlockSpec((dim, dim), lambda i: (0, 0),
                             pipeline_mode=pl.Buffered(1)),      # Wout (bf16)
                pl.BlockSpec((1, dim), lambda i: (0, 0),
                             pipeline_mode=pl.Buffered(1)),      # bout
            ],
            out_specs=pl.BlockSpec((tm_eff, dim), lambda i: (i, 0)),
        ),
        compiler_params=pltpu.CompilerParams(
            dimension_semantics=("parallel",),
            vmem_limit_bytes=_vmem_limit(est_out, vmem_cap),
        ),
        cost_estimate=cost_out,
    )(ff2, wout_b, bout_2)

    out2 = out2[:M]
    ff2 = ff2[:M]
    return out2.reshape(B, S, dim), ff2.reshape(B, S, dim)


# ----------------------------- reference & tests ---------------------------


def _reference(x, w1, b1, w2, b2, wout, bout):
    h = jax.nn.gelu(x @ w1 + b1, approximate=True)
    ff = h @ w2 + b2
    out = ff @ wout + bout
    return out, ff


if __name__ == "__main__":
    # ---- Test 1: module-default toy config, zero-initialized out Linear ----
    B, S, dim = 2, 8, 32
    inner = 4 * dim  # diffusers FeedForward default inner_dim = 4 * dim

    key = jax.random.PRNGKey(0)
    kx, k1, kb1, k2, kb2 = jax.random.split(key, 5)

    x = jax.random.normal(kx, (B, S, dim), dtype=jnp.float32)
    w1 = jax.random.normal(k1, (dim, inner), dtype=jnp.float32) * 0.05
    b1 = jax.random.normal(kb1, (inner,), dtype=jnp.float32) * 0.05
    w2 = jax.random.normal(k2, (inner, dim), dtype=jnp.float32) * 0.05
    b2 = jax.random.normal(kb2, (dim,), dtype=jnp.float32) * 0.05
    wout = jnp.zeros((dim, dim), dtype=jnp.float32)
    bout = jnp.zeros((dim,), dtype=jnp.float32)

    out_hs, ctrl_hs = input_mapping_block(x, w1, b1, w2, b2, wout, bout)
    out_hs, ctrl_hs = jax.block_until_ready((out_hs, ctrl_hs))

    ref_out, ref_ctrl = _reference(x, w1, b1, w2, b2, wout, bout)
    # bf16 MXU operands (f32 accumulation) -> loosened tolerances vs f32 reference.
    assert jnp.allclose(out_hs, ref_out, atol=3e-2, rtol=3e-2)
    assert jnp.allclose(ctrl_hs, ref_ctrl, atol=3e-2, rtol=3e-2)
    assert jnp.all(out_hs == 0.0)  # zero-initialized output Linear stays exactly zero

    # ---- Test 2: exercises inner-dim panel accumulation + row padding ----
    B2, S2, dim2 = 1, 10, 128
    inner2 = 4 * dim2
    key2 = jax.random.PRNGKey(1)
    ks = jax.random.split(key2, 7)
    x_b = jax.random.normal(ks[0], (B2, S2, dim2), dtype=jnp.float32)
    w1_b = jax.random.normal(ks[1], (dim2, inner2), dtype=jnp.float32) * 0.03
    b1_b = jax.random.normal(ks[2], (inner2,), dtype=jnp.float32) * 0.03
    w2_b = jax.random.normal(ks[3], (inner2, dim2), dtype=jnp.float32) * 0.03
    b2_b = jax.random.normal(ks[4], (dim2,), dtype=jnp.float32) * 0.03
    wout_b = jax.random.normal(ks[5], (dim2, dim2), dtype=jnp.float32) * 0.03
    bout_b = jax.random.normal(ks[6], (dim2,), dtype=jnp.float32) * 0.03

    out_b, ctrl_b = input_mapping_block(x_b, w1_b, b1_b, w2_b, b2_b,
                                        wout_b, bout_b, tk=256)
    out_b, ctrl_b = jax.block_until_ready((out_b, ctrl_b))
    ref_out_b, ref_ctrl_b = _reference(x_b, w1_b, b1_b, w2_b, b2_b, wout_b, bout_b)
    assert jnp.allclose(out_b, ref_out_b, atol=3e-2, rtol=3e-2)
    assert jnp.allclose(ctrl_b, ref_ctrl_b, atol=3e-2, rtol=3e-2)

    print("KERNEL_OK")
</pallas_src>

<mosaic_0001>
module attributes {stable_mosaic.version = 11 : i64} {
  func.func @_ff_kernel(%arg0: i32, %arg1: i32, %arg2: memref<8x32xbf16, #tpu.memory_space<vmem>>, %arg3: memref<32x128xbf16, #tpu.memory_space<vmem>>, %arg4: memref<1x128xf32, #tpu.memory_space<vmem>>, %arg5: memref<128x32xbf16, #tpu.memory_space<vmem>>, %arg6: memref<1x32xf32, #tpu.memory_space<vmem>>, %arg7: memref<8x32xf32, #tpu.memory_space<vmem>>, %arg8: memref<8x32xf32, #tpu.memory_space<vmem>>) attributes {dimension_semantics = [#tpu.dimension_semantics<parallel>, #tpu.dimension_semantics<arbitrary>], iteration_bounds = array<i64: 2, 1>, scalar_prefetch = 0 : i64, scratch_operands = 1 : i64, tpu.core_type = #tpu.core_type<tc>, window_params = [{transform_indices = @transform_0, window_bounds = array<i64: 8, 32>}, {transform_indices = @transform_1, window_bounds = array<i64: 32, 128>}, {transform_indices = @transform_2, window_bounds = array<i64: 1, 128>}, {transform_indices = @transform_3, window_bounds = array<i64: 128, 32>}, {pipeline_mode = #tpu.pipeline_mode<synchronous>, transform_indices = @transform_4, window_bounds = array<i64: 1, 32>}, {transform_indices = @transform_5, window_bounds = array<i64: 8, 32>}]} {
    %c0_i32 = arith.constant 0 : i32
    %0 = arith.cmpi eq, %arg1, %c0_i32 : i32
    %1 = arith.extui %0 : i1 to i32
    %c0_i32_0 = arith.constant 0 : i32
    %2 = arith.cmpi ne, %1, %c0_i32_0 : i32
    scf.if %2 {
      %cst_19 = arith.constant 0.000000e+00 : f32
      %31 = vector.broadcast %cst_19 : f32 to vector<8x32xf32>
      %c0_20 = arith.constant 0 : index
      %c0_21 = arith.constant 0 : index
      %32 = vector.load %arg8[%c0_20, %c0_21] : memref<8x32xf32, #tpu.memory_space<vmem>>, vector<8x32xf32>
      tpu.vector_store %arg8[%c0_20, %c0_21], %31 {strides = array<i32>} : memref<8x32xf32, #tpu.memory_space<vmem>>, vector<8x32xf32>,
    } else {
    }
    %c0 = arith.constant 0 : index
    %c0_1 = arith.constant 0 : index
    %3 = vector.load %arg2[%c0, %c0_1] : memref<8x32xbf16, #tpu.memory_space<vmem>>, vector<8x32xbf16>
    %c0_2 = arith.constant 0 : index
    %c0_3 = arith.constant 0 : index
    %4 = vector.load %arg3[%c0_2, %c0_3] : memref<32x128xbf16, #tpu.memory_space<vmem>>, vector<32x128xbf16>
    %cst = arith.constant dense<0.000000e+00> : vector<8x128xf32>
    %5 = tpu.matmul %3, %4, %cst {dimension_numbers = #tpu.dot_dimension_numbers<[1], [0], [0], [1], [0, 0, 1, 1], [], []>} : vector<8x32xbf16>, vector<32x128xbf16>, vector<8x128xf32> -> vector<8x128xf32>
    %c0_4 = arith.constant 0 : index
    %c0_5 = arith.constant 0 : index
    %6 = vector.load %arg4[%c0_4, %c0_5] : memref<1x128xf32, #tpu.memory_space<vmem>>, vector<1x128xf32>
    %7 = vector.broadcast %6 : vector<1x128xf32> to vector<8x128xf32>
    %8 = arith.addf %5, %7 : vector<8x128xf32>
    %9 = arith.mulf %8, %8 : vector<8x128xf32>
    %10 = arith.mulf %8, %9 : vector<8x128xf32>
    %cst_6 = arith.constant 4.471500e-02 : f32
    %11 = vector.broadcast %cst_6 : f32 to vector<8x128xf32>
    %12 = arith.mulf %11, %10 : vector<8x128xf32>
    %13 = arith.addf %8, %12 : vector<8x128xf32>
    %cst_7 = arith.constant 0.797884583 : f32
    %14 = vector.broadcast %cst_7 : f32 to vector<8x128xf32>
    %15 = arith.mulf %14, %13 : vector<8x128xf32>
    %16 = math.tanh %15 : vector<8x128xf32>
    %cst_8 = arith.constant 1.000000e+00 : f32
    %17 = vector.broadcast %cst_8 : f32 to vector<8x128xf32>
    %18 = arith.addf %17, %16 : vector<8x128xf32>
    %cst_9 = arith.constant 5.000000e-01 : f32
    %19 = vector.broadcast %cst_9 : f32 to vector<8x128xf32>
    %20 = arith.mulf %19, %18 : vector<8x128xf32>
    %21 = arith.mulf %8, %20 : vector<8x128xf32>
    %c0_10 = arith.constant 0 : index
    %c0_11 = arith.constant 0 : index
    %22 = vector.load %arg8[%c0_10, %c0_11] : memref<8x32xf32, #tpu.memory_space<vmem>>, vector<8x32xf32>
    %23 = arith.truncf %21 : vector<8x128xf32> to vector<8x128xbf16>
    %c0_12 = arith.constant 0 : index
    %c0_13 = arith.constant 0 : index
    %24 = vector.load %arg5[%c0_12, %c0_13] : memref<128x32xbf16, #tpu.memory_space<vmem>>, vector<128x32xbf16>
    %cst_14 = arith.constant dense<0.000000e+00> : vector<8x32xf32>
    %25 = tpu.matmul %23, %24, %cst_14 {dimension_numbers = #tpu.dot_dimension_numbers<[1], [0], [0], [1], [0, 0, 1, 1], [], []>} : vector<8x128xbf16>, vector<128x32xbf16>, vector<8x32xf32> -> vector<8x32xf32>
    %26 = arith.addf %22, %25 : vector<8x32xf32>
    %c0_15 = arith.constant 0 : index
    %c0_16 = arith.constant 0 : index
    %27 = vector.load %arg8[%c0_15, %c0_16] : memref<8x32xf32, #tpu.memory_space<vmem>>, vector<8x32xf32>
    tpu.vector_store %arg8[%c0_15, %c0_16], %26 {strides = array<i32>} : memref<8x32xf32, #tpu.memory_space<vmem>>, vector<8x32xf32>,
    %c0_i32_17 = arith.constant 0 : i32
    %28 = arith.cmpi eq, %arg1, %c0_i32_17 : i32
    %29 = arith.extui %28 : i1 to i32
    %c0_i32_18 = arith.constant 0 : i32
    %30 = arith.cmpi ne, %29, %c0_i32_18 : i32
    scf.if %30 {
      %c0_19 = arith.constant 0 : index
      %c0_20 = arith.constant 0 : index
      %31 = vector.load %arg8[%c0_19, %c0_20] : memref<8x32xf32, #tpu.memory_space<vmem>>, vector<8x32xf32>
      %c0_21 = arith.constant 0 : index
      %c0_22 = arith.constant 0 : index
      %32 = vector.load %arg6[%c0_21, %c0_22] : memref<1x32xf32, #tpu.memory_space<vmem>>, vector<1x32xf32>
      %33 = vector.broadcast %32 : vector<1x32xf32> to vector<8x32xf32>
      %34 = arith.addf %31, %33 : vector<8x32xf32>
      %c0_23 = arith.constant 0 : index
      %c0_24 = arith.constant 0 : index
      %35 = vector.load %arg7[%c0_23, %c0_24] : memref<8x32xf32, #tpu.memory_space<vmem>>, vector<8x32xf32>
      tpu.vector_store %arg7[%c0_23, %c0_24], %34 {strides = array<i32>} : memref<8x32xf32, #tpu.memory_space<vmem>>, vector<8x32xf32>,
    } else {
    }
    return
  }
  func.func @transform_0(%arg0: i32, %arg1: i32) -> (i32, i32) {
    %c0_i32 = arith.constant 0 : i32
    %c0_i32_0 = arith.constant 0 : i32
    return %arg0, %c0_i32 : i32, i32
  }
  func.func @transform_1(%arg0: i32, %arg1: i32) -> (i32, i32) {
    %c0_i32 = arith.constant 0 : i32
    %c0_i32_0 = arith.constant 0 : i32
    return %c0_i32, %arg1 : i32, i32
  }
  func.func @transform_2(%arg0: i32, %arg1: i32) -> (i32, i32) {
    %c0_i32 = arith.constant 0 : i32
    %c0_i32_0 = arith.constant 0 : i32
    return %c0_i32, %arg1 : i32, i32
  }
  func.func @transform_3(%arg0: i32, %arg1: i32) -> (i32, i32) {
    %c0_i32 = arith.constant 0 : i32
    %c0_i32_0 = arith.constant 0 : i32
    return %arg1, %c0_i32 : i32, i32
  }
  func.func @transform_4(%arg0: i32, %arg1: i32) -> (i32, i32) {
    %c0_i32 = arith.constant 0 : i32
    %c0_i32_0 = arith.constant 0 : i32
    %c0_i32_1 = arith.constant 0 : i32
    return %c0_i32, %c0_i32_0 : i32, i32
  }
  func.func @transform_5(%arg0: i32, %arg1: i32) -> (i32, i32) {
    %c0_i32 = arith.constant 0 : i32
    %c0_i32_0 = arith.constant 0 : i32
    return %arg0, %c0_i32 : i32, i32
  }
}

</mosaic_0001>

<bundles_post_ra>
// kernel: tpu_custom_call.1
= control target key start
LH: loop header
LB: loop body
LE: loop exit
PB: predicated region body
PF: predicated region fallthrough
CT: control target
= control target key end

     0   :  { %10 = vsyncpa [#allocation4], 0  ;;  %s1014_s0 = inlined_call_operand.vmem [shape: bf16[16,32], index: 0, kind: input, shape index: {}]   ;;  %s1015_s1 = inlined_call_operand.vmem [shape: bf16[32,128], index: 1, kind: input, shape index: {}]   ;;  %s1016_s2 = inlined_call_operand.vmem [shape: f32[1,128], index: 2, kind: input, shape index: {}]   ;;  %s1017_s3 = inlined_call_operand.vmem [shape: bf16[128,32], index: 3, kind: input, shape index: {}]   ;;  %s1018_s4 = inlined_call_operand.vmem [shape: f32[1,32], index: 4, kind: input, shape index: {}]   ;;  %s1019_s5 = inlined_call_operand.hbm [shape: f32[16,32], index: 5, kind: output, shape index: {}]  }
   0x1   :  { %12 = vsyncpa [#allocation4 + $0x1], 0  ;;  %s862_s18 = smov 0   ;;  %s864_s19 = smov 0  }
   0x2   :  { %s866_s20 = smov 0   ;;  %s868_s21 = smov 0  }
   0x3   :  { %s870_s22 = smov 0   ;;  %s872_s23 = smov 0  }
   0x4 LB: > { %s613_s24 = sadd.s32 4294967295, %s827_s23   ;;  %s614_s25 = sadd.s32 4294967294, %s827_s23   ;;  %s827_s23 = sphi %s872_s23, %s18_s23   ;;  %s823_s22 = sphi %s870_s22, %s1026_s22   ;;  %s819_s21 = sphi %s868_s21, %s1025_s21   ;;  %s815_s20 = sphi %s866_s20, %s1024_s20   ;;  %s811_s19 = sphi %s864_s19, %s1023_s19   ;;  %s807_s18 = sphi %s862_s18, %s1022_s18  }
   0x5   : > { %s30_s26 = sadd.s32 1, %s823_s22  ;;  %s162_s27 = sadd.s32 1, %s815_s20 }
   0x6   : > { %p32_p0 = scmp.ge.s32.totalorder %s30_s26, 2  ;;  %p172_p1 = scmp.ne.s32.totalorder %s815_s20, %s811_s19 }
   0x7   : > { %p173_p2 = scmp.eq.s32.totalorder %s613_s24, 1  ;;  %p178_p3 = scmp.ne.s32.totalorder %s811_s19, %s807_s18 }
   0x8   : > { %s1028_s26 = smov (%p32_p0, %s30_s26), 0  ;;  %p179_p5 = scmp.eq.s32.totalorder %s614_s25, 1 }
   0x9   : > { %p902_p4 = por %p173_p2, %p172_p1  ;;  %s159_s29 = ssub.s32 %s823_s22, %s1028_s26 }
   0xa   : > { %p620_p6 = scmp.ge.s32.totalorder %s827_s23, 1  ;;  %p160_p7 = scmp.eq.s32.totalorder %s159_s29, 0 }
   0xb   : > { %p909_p8 = por %p179_p5, %p178_p3  ;;  %p229_p9 = scmp.lt.s32.totalorder %s827_s23, 3 }
   0xc   : > { %s915_s6 = scalar_select %p160_p7, %s815_s20, %s162_s27  }
   0xd   : > { %p230_p10 = pnand %p620_p6, %p229_p9 }
   0xe   : > { %v737_v0 = vld [vmem:[%s1015_s1] sm:$0xff] (!%p230_p10)   ;;  %v829_v1 = vmov (!%p230_p10), 0.0   ;;  %v738_v2 = vld [vmem:[%s1015_s1 + $0x8] sm:$0xff] (!%p230_p10)   ;;  %vm830_vm0 = vmmov (!%p230_p10), 0   ;;  %p268_p11 = scmp.lt.s32.totalorder (!%p230_p10), %s819_s21, 1  ;;  %vm290_vm1 = vcmask (!%p230_p10), 261120  }
   0xf   : > { %233 = sbr.rel (%p230_p10) target bundleno = 508 (0x1fc), region = 40  ;;  %652 = vmatprep.subr.bf16.mxu0 (!%p230_p10), %v829_v1  ;;  %660 = vmatprep.subr.bf16.mxu1 (!%p230_p10), %v829_v1  ;;  %291 = vst.msk [vmem:[#allocation2] sm:$0xff] (!%p230_p10), %vm290_vm1, %v829_v1  ;;  %v739_v4 = vld [vmem:[%s1017_s3] sm:$0xff] (!%p230_p10)   ;;  %v740_v5 = vld [vmem:[%s1017_s3 + $0x8] sm:$0xff] (!%p230_p10)   ;;  %v741_v6 = vld [vmem:[%s1017_s3 + $0x10] sm:$0xff] (!%p230_p10)   ;;  %s265_s25 = sand.u32 (!%p230_p10), 1, %s811_s19  }
  0x10   : > { %653 = vmatpush3.bf16.msra.mxu0 (!%p230_p10), %v737_v0  ;;  %656 = vmatprep.mubr.msk.bf16.mxu0 (!%p230_p10), %vm830_vm0, %v829_v1  ;;  %v742_v7 = vld [vmem:[%s1017_s3 + $0x18] sm:$0xff] (!%p230_p10)   ;;  %v743_v8 = vld [vmem:[%s1017_s3 + $0x20] sm:$0xff] (!%p230_p10)   ;;  %v744_v9 = vld [vmem:[%s1017_s3 + $0x28] sm:$0xff] (!%p230_p10)   ;;  %s621_s27 = sshll.u32 (!%p230_p10), %s265_s25, 3  ;;  %s637_s8 = sshll.u32 (!%p230_p10), %s819_s21, 7 }
  0x11   : > { %654 = vmatprep.subr.bf16.mxu0 (!%p230_p10), %v829_v1  ;;  %676 = vmatprep.mubr.msk.bf16.mxu1 (!%p230_p10), %vm830_vm0, %v829_v1  ;;  %v745_v10 = vld [vmem:[%s1017_s3 + $0x30] sm:$0xff] (!%p230_p10)   ;;  %v746_v11 = vld [vmem:[%s1017_s3 + $0x38] sm:$0xff] (!%p230_p10)   ;;  %v623_v12 = vld [vmem:[%s1016_s2] ss:$0 sm:$0xff] (!%p230_p10)  ;;  %s267_s9 = scalar_lea.vmem (!%p230_p10), [#allocation3], %s621_s27  ;;  %s966_s13 = scalar_lea.hbm (!%p230_p10), %s1019_s5, %s637_s8 }
  0x12   : > { %661 = vmatpush3.bf16.msra.mxu1 (!%p230_p10), %v739_v4  ;;  %v635_v34 = vld [vmem:[%s1018_s4] ss:$0 sm:$0xff] (!%p230_p10)  ;;  %s504_s10 = sshll.u32 (!%p230_p10), %s267_s9, 4  ;;  %s491_s14 = scalar_lea.sflag (!%p230_p10), [#allocation4], %s265_s25  ;;  %s968_s10 = int_to_ptr.vmem [resolvable:$true] %s504_s10 }
  0x13   : > { %662 = vmatprep.subr.bf16.mxu1 (!%p230_p10), %v829_v1 }
  0x14   : > { %655 = vmatpush3.bf16.msra.mxu0 (!%p230_p10), %v738_v2 }
  0x16   : > { %s269_s11 = scalar_select %p268_p11, %s819_s21, 1  ;;  %663 = vmatpush3.bf16.msra.mxu1 %v740_v5  ;;  %v369_v28 = vld [vmem:[#allocation2] sm:$0xff] }
  0x17   : > { %664 = vmatprep.subr.bf16.mxu1 %v829_v1  ;;  %s831_s21 = smov [#allocation3]  }
  0x18   : > { %s622_s12 = sshll.u32 %s269_s11, 2  ;;  %s753_s16 = sshll.u32 %s831_s21, 4  ;;  %s754_s16 = int_to_ptr.vmem [resolvable:$false] %s753_s16 }
  0x19   : > { %s271_s15 = scalar_lea.vmem %s1014_s0, %s622_s12  ;;  %s755_s17 = scalar_lea.vmem %s754_s16, 256 }
  0x1a   : > { %v292_v3 = vld [vmem:[%s271_s15] sm:$0xf]  ;;  %665 = vmatpush3.bf16.msra.mxu1 %v741_v6  ;;  %s749_s15 = scalar_lea.vmem %s968_s10, 128  ;;  %p756_p1 = scmp.lt.s32.totalorder %s968_s10, %s754_s16 }
  0x1b   : > { %657 = vmatmul.mubr.msk.bf16.vlgmr.msra.gmra.mrb[0].mxu0 %vm290_vm1, %v292_v3  ;;  %666 = vmatprep.subr.bf16.mxu1 %v829_v1  ;;  %p750_p12 = scmp.ne.s32.totalorder %s968_s10, %s749_s15  ;;  %p757_p2 = scmp.lt.s32.totalorder %s755_s17, %s749_s15 }
  0x1d   : > { %p751_p13 = pnand %p750_p12, %p902_p4  ;;  %p758_p3 = por %p757_p2, %p756_p1 }
  0x1e   : > { %667 = vmatpush3.bf16.msra.mxu1 %v742_v7 }
  0x1f   : > { %668 = vmatprep.subr.bf16.mxu1 %v829_v1  ;;  %p752_p0 = pneg %p751_p13 }
  0x21   : > { %p759_p5 = pnand %p758_p3, %p752_p0 }
  0x22   : > { %669 = vmatpush3.bf16.msra.mxu1 %v743_v8 }
  0x23   : > { %670 = vmatprep.subr.bf16.mxu1 %v829_v1 }
  0x26   : > { %671 = vmatpush3.bf16.msra.mxu1 %v744_v9 }
  0x27   : > { %672 = vmatprep.subr.bf16.mxu1 %v829_v1 }
  0x2a   : > { %673 = vmatpush3.bf16.msra.mxu1 %v745_v10 }
  0x2b   : > { %674 = vmatprep.subr.bf16.mxu1 %v829_v1 }
  0x2e   : > { %675 = vmatpush3.bf16.msra.mxu1 %v746_v11 }
  0xee   : > { %v354_v13 = vpop.f32.mrb[0].mxu0 }
  0xef   : > { %v355_v14 = vadd.f32 %v623_v12, %v354_v13  ;;  %v658_v15 = vpop.f32.mrb[1].mxu0 }
  0xf0   : > { %v357_v16 = vpop.f32.mrb[2].mxu0 }
  0xf1   : > { %v360_v17 = vmul.f32 %v355_v14, %v355_v14  ;;  %v659_v18 = vpop.f32.mrb[3].mxu0 }
  0xf3   : > { %v361_v19 = vmul.f32 %v360_v17, %v355_v14 }
  0xf5   : > { %v362_v20 = vmul.f32 0.044715, %v361_v19 }
  0xf7   : > { %v363_v21 = vadd.f32 %v362_v20, %v355_v14 }
  0xf9   : > { %v364_v22 = vmul.f32 0.7978846, %v363_v21 }
  0xfb   : > { %747 = vtanh.f32 %v364_v22 }
 0x105   : > { %v748_v23 = vpop.eup %747 }
 0x106   : > { %v366_v24 = vadd.f32 1.0, %v748_v23 }
 0x108   : > { %v367_v25 = vmul.f32 0.5, %v366_v24 }
 0x10a   : > { %v368_v26 = vmul.f32 %v367_v25, %v355_v14 }
 0x10c   : > { %v370_v27 = vpack.c.bf16 %v368_v26, %v368_v26 }
 0x10e   : > { %677 = vmatmul.mubr.bf16.vlgmr.msra.gmra.mrb[0].mxu1 %v370_v27 }
 0x1e1   : > { %v469_v29 = vpop.f32.mrb[0].mxu1 }
 0x1e2   : > { %v475_v30 = vadd.f32 %v469_v29, %v369_v28  ;;  %v678_v31 = vpop.f32.mrb[1].mxu1 }
 0x1e3   : > { %v472_v32 = vpop.f32.mrb[2].mxu1 }
 0x1e4   : > { %476 = vst.msk [vmem:[#allocation2] sm:$0xff] %vm290_vm1, %v475_v30  ;;  %v679_v33 = vpop.f32.mrb[3].mxu1 }
 0x1eb   : > { %v480_v35 = vld [vmem:[#allocation2] sm:$0xff] }
 0x1ec   : > { %v488_v36 = vadd.f32 %v635_v34, %v480_v35 }
 0x1ee   : > { %489 = vst.msk [vmem:[%s267_s9] sm:$0xff] %vm290_vm1, %v488_v36 }
 0x1ef   : > { %762 = shalt.err (!%p759_p5)
}
 0x1f0   : > { %s763_s24 = scalar_lea.hbm %s966_s13, 128  ;;  %s767_s29 = scalar_lea.hbm %s1019_s5, 256 }
 0x1f1   : > { %p764_p6 = scmp.ne.s32.totalorder %s966_s13, %s763_s24  ;;  %p768_p10 = scmp.lt.u32.totalorder %s966_s13, %s1019_s5 }
 0x1f2   : > { %p769_p11 = scmp.lt.u32.totalorder %s767_s29, %s763_s24  ;;  %p771_p13 = scmp.lt.u32.totalorder %s763_s24, %s966_s13 }
 0x1f3   : > { %p765_p7 = pnand %p764_p6, %p902_p4 }
 0x1f4   : > { %p770_p12 = por %p769_p11, %p768_p10 }
 0x1f5   : > { %p766_p9 = pneg %p765_p7 }
 0x1f6   : > { %p772_p0 = por %p771_p13, %p770_p12 }
 0x1f8   : > { %p773_p1 = pnand %p772_p0, %p766_p9 }
 0x1fa   : > { %776 = shalt.err (!%p773_p1)
}
 0x1fb   : > { %680 = dma.vmem_to_hbm [thread:$0]  (%p902_p4), %s968_s10, 128, %s966_s13, %s491_s14  }
 0x1fc PF: > { %p686_p2 = scmp.ge.s32.totalorder %s827_s23, 2  ;;  %s516_s9 = sand.u32 1, %s807_s18  }
 0x1fd   : > { %s517_s11 = scalar_lea.sflag [#allocation4], %s516_s9 }
 0x1fe   : > { %p683_p3 = pnand %p686_p2, %p909_p8 }
 0x200   : > { %802 = dma.done.wait (!%p683_p3), %s517_s11, 128  }
 0x201   : > { %804 = vsyncadd (!%p683_p3), %s517_s11, 4294967168  ;;  %s18_s23 = sadd.s32 1, %s827_s23   ;;  %s1022_s18 = smov %s811_s19 }
 0x202   : > { %p15_p5 = scmp.ge.s32.totalorder %s18_s23, 4   ;;  %s1023_s19 = smov %s815_s20 }
 0x203   : > { %s1024_s20 = smov %s915_s6  ;;  %s1025_s21 = smov %s823_s22 }
 0x204   : > { %s1026_s22 = smov %s1028_s26  ;;  %17 = sbr.rel (!%p15_p5) target bundleno = 4 (0x4), region = 92 }
 0x20b   :  { %522 = vsyncpa [#allocation4], 1 }
 0x20c   :  { %524 = vsyncpa [#allocation4 + $0x1], 1 }

</bundles_post_ra>
